<compile_context>
chip_gen: v5e
topology: v5e:2x2
jax: 0.10.0
libtpu: 0.0.40
codegen_flags: <defaults>
</compile_context>

<pallas_src>
import math
import functools

import jax
import jax.numpy as jnp
from jax.experimental import pallas as pl
from jax.experimental.pallas import tpu as pltpu


# ----------------------------- fused kernel ---------------------------------

def _softmax_lastdim(x):
    x = x - jnp.max(x, axis=-1, keepdims=True)
    e = jnp.exp(x)
    return e * pl.reciprocal(jnp.sum(e, axis=-1, keepdims=True), approx=True)


def _pcsi_kernel(wf_ref, vf_ref, ww1_ref, bw1_ref, wvc_ref, bvc_ref,
                 wo_ref, bo_ref, o_ref, *, heads, d_k):
    d = heads * d_k
    wf = wf_ref[0]          # (Nw, d)   one batch element per grid step
    vf = vf_ref[0]          # (Nv, d)

    # Fused projections.  v_linear1..4 share the input, so their weights are
    # concatenated into one (d, 4d) slab -> a single lane-dense (128-wide)
    # MXU pass instead of four narrow ones.
    w1 = jnp.dot(wf, ww1_ref[...], preferred_element_type=jnp.float32) + bw1_ref[...]
    vc = jnp.dot(vf, wvc_ref[...], preferred_element_type=jnp.float32) + bvc_ref[...]

    # Contract the last (d_k) axes of both operands: A @ B^T with no transpose.
    dn = (((1,), (1,)), ((), ()))

    head_outs = []
    for h in range(heads):                       # static unroll over heads
        lo = h * d_k
        w1_h = w1[:, lo:lo + d_k]                # (Nw, dk)
        v1_h = vc[:, 0 * d + lo:0 * d + lo + d_k]   # (Nv, dk)
        v2_h = vc[:, 1 * d + lo:1 * d + lo + d_k]
        v3_h = vc[:, 2 * d + lo:2 * d + lo + d_k]
        v4_h = vc[:, 3 * d + lo:3 * d + lo + d_k]

        # bias term: softmax(w1 @ v3^T, -1) summed over the w positions.
        s_wv = jax.lax.dot_general(w1_h, v3_h, dn,
                                   preferred_element_type=jnp.float32)  # (Nw, Nv)
        bias = jnp.sum(_softmax_lastdim(s_wv), axis=0, keepdims=True)   # (1, Nv)

        s_vv = jax.lax.dot_general(v1_h, v2_h, dn,
                                   preferred_element_type=jnp.float32)  # (Nv, Nv)
        p = _softmax_lastdim(s_vv + bias)
        # dropout(p) is identity at inference.
        head_outs.append(jnp.dot(p, v4_h,
                                 preferred_element_type=jnp.float32))   # (Nv, dk)

    concat = jnp.concatenate(head_outs, axis=-1)                        # (Nv, d)
    o_ref[0] = (jnp.dot(concat, wo_ref[...],
                        preferred_element_type=jnp.float32) + bo_ref[...])


# ----------------------------- wrapper ---------------------------------------

def pcsi_forward(params, w_feat, v_feat, heads):
    B, Nw, d = w_feat.shape
    Nv = v_feat.shape[1]
    d_k = d // heads

    ww1, bw1 = params["w1"]
    # Concatenate v_linear1..4 weights/biases -> one lane-dense projection.
    wvc = jnp.concatenate([params["v1"][0], params["v2"][0],
                           params["v3"][0], params["v4"][0]], axis=1)   # (d, 4d)
    bvc = jnp.concatenate([params["v1"][1], params["v2"][1],
                           params["v3"][1], params["v4"][1]], axis=0)   # (4d,)
    wo, bo = params["out"]

    kernel = functools.partial(_pcsi_kernel, heads=heads, d_k=d_k)

    # TODO(synk): if d_model / sequence lengths are scaled far beyond this toy
    # size, add M/K tiling (reduction axis last, "arbitrary", VMEM accumulator)
    # so the full-slab weights do not exceed v7x's 64 MiB VMEM.
    return pl.pallas_call(
        kernel,
        out_shape=jax.ShapeDtypeStruct((B, Nv, d), jnp.float32),
        grid=(B,),
        in_specs=[
            pl.BlockSpec((1, Nw, d), lambda b: (b, 0, 0)),
            pl.BlockSpec((1, Nv, d), lambda b: (b, 0, 0)),
            pl.BlockSpec((d, d), lambda b: (0, 0)),
            pl.BlockSpec((1, d), lambda b: (0, 0)),
            pl.BlockSpec((d, 4 * d), lambda b: (0, 0)),
            pl.BlockSpec((1, 4 * d), lambda b: (0, 0)),
            pl.BlockSpec((d, d), lambda b: (0, 0)),
            pl.BlockSpec((1, d), lambda b: (0, 0)),
        ],
        out_specs=pl.BlockSpec((1, Nv, d), lambda b: (b, 0, 0)),
        # At these sizes, serial on one TC beats cross-TC coordination (per
        # review); switch to "parallel" only once per-step work is large.
        compiler_params=pltpu.CompilerParams(
            dimension_semantics=("arbitrary",)),
    )(w_feat, v_feat,
      ww1, bw1.reshape(1, d),
      wvc, bvc.reshape(1, 4 * d),
      wo, bo.reshape(1, d))


# ----------------------------- pure-JAX reference ----------------------------

def pcsi_reference(params, w_feat, v_feat, heads):
    B, Nw, d = w_feat.shape
    Nv = v_feat.shape[1]
    d_k = d // heads

    def lin(x, wb):
        w, b = wb
        return x @ w + b

    def split(x):
        return x.reshape(B, -1, heads, d_k).transpose(0, 2, 1, 3)

    w1 = split(lin(w_feat, params["w1"]))
    v1 = split(lin(v_feat, params["v1"]))
    v2 = split(lin(v_feat, params["v2"]))
    v3 = split(lin(v_feat, params["v3"]))
    v4 = split(lin(v_feat, params["v4"]))

    s_wv = jnp.einsum("bhqd,bhkd->bhqk", w1, v3)
    bias = jax.nn.softmax(s_wv, axis=-1).sum(axis=-2)[:, :, None, :]
    scores = jnp.einsum("bhqd,bhkd->bhqk", v1, v2) + bias
    p = jax.nn.softmax(scores, axis=-1)
    o = jnp.einsum("bhqk,bhkd->bhqd", p, v4)
    concat = o.transpose(0, 2, 1, 3).reshape(B, Nv, d)
    return lin(concat, params["out"])


# ----------------------------- param init ------------------------------------

def init_linear(key, din, dout):
    kw, kb = jax.random.split(key)
    bound = 1.0 / math.sqrt(din)
    w = jax.random.uniform(kw, (din, dout), jnp.float32, -bound, bound)
    b = jax.random.uniform(kb, (dout,), jnp.float32, -bound, bound)
    return w, b


def init_params(key, d_model):
    # w2 mirrors w_linear2 in the torch module; its output is unused in the
    # reference forward, so it is initialized but never applied.
    names = ["w1", "w2", "v1", "v2", "v3", "v4", "out"]
    keys = jax.random.split(key, len(names))
    return {n: init_linear(k, d_model, d_model) for n, k in zip(names, keys)}


# ----------------------------- main -------------------------------------------

if __name__ == "__main__":
    d_model, heads = 32, 4
    B, Nw, Nv = 2, 8, 8

    key = jax.random.PRNGKey(0)
    kp, kw, kv = jax.random.split(key, 3)
    params = init_params(kp, d_model)

    w_feat = jax.random.normal(kw, (B, Nw, d_model), jnp.float32)
    v_feat = jax.random.normal(kv, (B, Nv, d_model), jnp.float32)

    out = pcsi_forward(params, w_feat, v_feat, heads)
    jax.block_until_ready(out)

    assert out.shape == (B, Nv, d_model)

    ref = pcsi_reference(params, w_feat, v_feat, heads)
    err = float(jnp.max(jnp.abs(out - ref)))
    assert err < 2e-2, f"max abs err {err}"

    print("KERNEL_OK")
</pallas_src>

<mosaic_0001>
module attributes {stable_mosaic.version = 11 : i64} {
  func.func @_pcsi_kernel(%arg0: i32, %arg1: memref<1x8x32xf32, #tpu.memory_space<vmem>>, %arg2: memref<1x8x32xf32, #tpu.memory_space<vmem>>, %arg3: memref<32x32xf32, #tpu.memory_space<vmem>>, %arg4: memref<1x32xf32, #tpu.memory_space<vmem>>, %arg5: memref<32x128xf32, #tpu.memory_space<vmem>>, %arg6: memref<1x128xf32, #tpu.memory_space<vmem>>, %arg7: memref<32x32xf32, #tpu.memory_space<vmem>>, %arg8: memref<1x32xf32, #tpu.memory_space<vmem>>, %arg9: memref<1x8x32xf32, #tpu.memory_space<vmem>>) attributes {dimension_semantics = [#tpu.dimension_semantics<arbitrary>], iteration_bounds = array<i64: 2>, scalar_prefetch = 0 : i64, scratch_operands = 0 : i64, tpu.core_type = #tpu.core_type<tc>, window_params = [{transform_indices = @transform_0, window_bounds = array<i64: 1, 8, 32>}, {transform_indices = @transform_1, window_bounds = array<i64: 1, 8, 32>}, {pipeline_mode = #tpu.pipeline_mode<synchronous>, transform_indices = @transform_2, window_bounds = array<i64: 32, 32>}, {pipeline_mode = #tpu.pipeline_mode<synchronous>, transform_indices = @transform_3, window_bounds = array<i64: 1, 32>}, {pipeline_mode = #tpu.pipeline_mode<synchronous>, transform_indices = @transform_4, window_bounds = array<i64: 32, 128>}, {pipeline_mode = #tpu.pipeline_mode<synchronous>, transform_indices = @transform_5, window_bounds = array<i64: 1, 128>}, {pipeline_mode = #tpu.pipeline_mode<synchronous>, transform_indices = @transform_6, window_bounds = array<i64: 32, 32>}, {pipeline_mode = #tpu.pipeline_mode<synchronous>, transform_indices = @transform_7, window_bounds = array<i64: 1, 32>}, {transform_indices = @transform_8, window_bounds = array<i64: 1, 8, 32>}]} {
    %c0 = arith.constant 0 : index
    %c0_0 = arith.constant 0 : index
    %c0_1 = arith.constant 0 : index
    %0 = vector.load %arg1[%c0, %c0_0, %c0_1] : memref<1x8x32xf32, #tpu.memory_space<vmem>>, vector<1x8x32xf32>
    %1 = vector.shape_cast %0 : vector<1x8x32xf32> to vector<8x32xf32>
    %c0_2 = arith.constant 0 : index
    %c0_3 = arith.constant 0 : index
    %c0_4 = arith.constant 0 : index
    %2 = vector.load %arg2[%c0_2, %c0_3, %c0_4] : memref<1x8x32xf32, #tpu.memory_space<vmem>>, vector<1x8x32xf32>
    %3 = vector.shape_cast %2 : vector<1x8x32xf32> to vector<8x32xf32>
    %c0_5 = arith.constant 0 : index
    %c0_6 = arith.constant 0 : index
    %4 = vector.load %arg3[%c0_5, %c0_6] : memref<32x32xf32, #tpu.memory_space<vmem>>, vector<32x32xf32>
    %cst = arith.constant dense<0.000000e+00> : vector<8x32xf32>
    %5 = tpu.matmul %1, %4, %cst {dimension_numbers = #tpu.dot_dimension_numbers<[1], [0], [0], [1], [0, 0, 1, 1], [], []>} : vector<8x32xf32>, vector<32x32xf32>, vector<8x32xf32> -> vector<8x32xf32>
    %c0_7 = arith.constant 0 : index
    %c0_8 = arith.constant 0 : index
    %6 = vector.load %arg4[%c0_7, %c0_8] : memref<1x32xf32, #tpu.memory_space<vmem>>, vector<1x32xf32>
    %7 = vector.broadcast %6 : vector<1x32xf32> to vector<8x32xf32>
    %8 = arith.addf %5, %7 : vector<8x32xf32>
    %c0_9 = arith.constant 0 : index
    %c0_10 = arith.constant 0 : index
    %9 = vector.load %arg5[%c0_9, %c0_10] : memref<32x128xf32, #tpu.memory_space<vmem>>, vector<32x128xf32>
    %cst_11 = arith.constant dense<0.000000e+00> : vector<8x128xf32>
    %10 = tpu.matmul %3, %9, %cst_11 {dimension_numbers = #tpu.dot_dimension_numbers<[1], [0], [0], [1], [0, 0, 1, 1], [], []>} : vector<8x32xf32>, vector<32x128xf32>, vector<8x128xf32> -> vector<8x128xf32>
    %c0_12 = arith.constant 0 : index
    %c0_13 = arith.constant 0 : index
    %11 = vector.load %arg6[%c0_12, %c0_13] : memref<1x128xf32, #tpu.memory_space<vmem>>, vector<1x128xf32>
    %12 = vector.broadcast %11 : vector<1x128xf32> to vector<8x128xf32>
    %13 = arith.addf %10, %12 : vector<8x128xf32>
    %14 = vector.extract_strided_slice %8 {offsets = [0, 0], sizes = [8, 8], strides = [1, 1]} : vector<8x32xf32> to vector<8x8xf32>
    %15 = vector.extract_strided_slice %13 {offsets = [0, 0], sizes = [8, 8], strides = [1, 1]} : vector<8x128xf32> to vector<8x8xf32>
    %16 = vector.extract_strided_slice %13 {offsets = [0, 32], sizes = [8, 8], strides = [1, 1]} : vector<8x128xf32> to vector<8x8xf32>
    %17 = vector.extract_strided_slice %13 {offsets = [0, 64], sizes = [8, 8], strides = [1, 1]} : vector<8x128xf32> to vector<8x8xf32>
    %18 = vector.extract_strided_slice %13 {offsets = [0, 96], sizes = [8, 8], strides = [1, 1]} : vector<8x128xf32> to vector<8x8xf32>
    %cst_14 = arith.constant dense<0.000000e+00> : vector<8x8xf32>
    %19 = tpu.matmul %14, %17, %cst_14 {dimension_numbers = #tpu.dot_dimension_numbers<[1], [1], [0], [0], [0, 0, 1, 0], [], []>} : vector<8x8xf32>, vector<8x8xf32>, vector<8x8xf32> -> vector<8x8xf32>
    %cst_15 = arith.constant dense<0xFF800000> : vector<8xf32>
    %20 = vector.multi_reduction <maximumf>, %19, %cst_15 [1] : vector<8x8xf32> to vector<8xf32>
    %21 = vector.shape_cast %20 : vector<8xf32> to vector<8x1xf32>
    %22 = vector.broadcast %21 : vector<8x1xf32> to vector<8x8xf32>
    %23 = arith.subf %19, %22 : vector<8x8xf32>
    %24 = math.exp %23 : vector<8x8xf32>
    %cst_16 = arith.constant dense<0.000000e+00> : vector<8xf32>
    %25 = vector.multi_reduction <add>, %24, %cst_16 [1] : vector<8x8xf32> to vector<8xf32>
    %26 = vector.shape_cast %25 : vector<8xf32> to vector<8x1xf32>
    %27 = tpu.reciprocal %26 {approx = true} : vector<8x1xf32> -> vector<8x1xf32>
    %28 = vector.broadcast %27 : vector<8x1xf32> to vector<8x8xf32>
    %29 = arith.mulf %24, %28 : vector<8x8xf32>
    %cst_17 = arith.constant dense<0.000000e+00> : vector<8xf32>
    %30 = vector.multi_reduction <add>, %29, %cst_17 [0] : vector<8x8xf32> to vector<8xf32>
    %31 = vector.shape_cast %30 : vector<8xf32> to vector<1x8xf32>
    %cst_18 = arith.constant dense<0.000000e+00> : vector<8x8xf32>
    %32 = tpu.matmul %15, %16, %cst_18 {dimension_numbers = #tpu.dot_dimension_numbers<[1], [1], [0], [0], [0, 0, 1, 0], [], []>} : vector<8x8xf32>, vector<8x8xf32>, vector<8x8xf32> -> vector<8x8xf32>
    %33 = vector.broadcast %31 : vector<1x8xf32> to vector<8x8xf32>
    %34 = arith.addf %32, %33 : vector<8x8xf32>
    %cst_19 = arith.constant dense<0xFF800000> : vector<8xf32>
    %35 = vector.multi_reduction <maximumf>, %34, %cst_19 [1] : vector<8x8xf32> to vector<8xf32>
    %36 = vector.shape_cast %35 : vector<8xf32> to vector<8x1xf32>
    %37 = vector.broadcast %36 : vector<8x1xf32> to vector<8x8xf32>
    %38 = arith.subf %34, %37 : vector<8x8xf32>
    %39 = math.exp %38 : vector<8x8xf32>
    %cst_20 = arith.constant dense<0.000000e+00> : vector<8xf32>
    %40 = vector.multi_reduction <add>, %39, %cst_20 [1] : vector<8x8xf32> to vector<8xf32>
    %41 = vector.shape_cast %40 : vector<8xf32> to vector<8x1xf32>
    %42 = tpu.reciprocal %41 {approx = true} : vector<8x1xf32> -> vector<8x1xf32>
    %43 = vector.broadcast %42 : vector<8x1xf32> to vector<8x8xf32>
    %44 = arith.mulf %39, %43 : vector<8x8xf32>
    %cst_21 = arith.constant dense<0.000000e+00> : vector<8x8xf32>
    %45 = tpu.matmul %44, %18, %cst_21 {dimension_numbers = #tpu.dot_dimension_numbers<[1], [0], [0], [1], [0, 0, 1, 1], [], []>} : vector<8x8xf32>, vector<8x8xf32>, vector<8x8xf32> -> vector<8x8xf32>
    %46 = vector.extract_strided_slice %8 {offsets = [0, 8], sizes = [8, 8], strides = [1, 1]} : vector<8x32xf32> to vector<8x8xf32>
    %47 = vector.extract_strided_slice %13 {offsets = [0, 8], sizes = [8, 8], strides = [1, 1]} : vector<8x128xf32> to vector<8x8xf32>
    %48 = vector.extract_strided_slice %13 {offsets = [0, 40], sizes = [8, 8], strides = [1, 1]} : vector<8x128xf32> to vector<8x8xf32>
    %49 = vector.extract_strided_slice %13 {offsets = [0, 72], sizes = [8, 8], strides = [1, 1]} : vector<8x128xf32> to vector<8x8xf32>
    %50 = vector.extract_strided_slice %13 {offsets = [0, 104], sizes = [8, 8], strides = [1, 1]} : vector<8x128xf32> to vector<8x8xf32>
    %cst_22 = arith.constant dense<0.000000e+00> : vector<8x8xf32>
    %51 = tpu.matmul %46, %49, %cst_22 {dimension_numbers = #tpu.dot_dimension_numbers<[1], [1], [0], [0], [0, 0, 1, 0], [], []>} : vector<8x8xf32>, vector<8x8xf32>, vector<8x8xf32> -> vector<8x8xf32>
    %cst_23 = arith.constant dense<0xFF800000> : vector<8xf32>
    %52 = vector.multi_reduction <maximumf>, %51, %cst_23 [1] : vector<8x8xf32> to vector<8xf32>
    %53 = vector.shape_cast %52 : vector<8xf32> to vector<8x1xf32>
    %54 = vector.broadcast %53 : vector<8x1xf32> to vector<8x8xf32>
    %55 = arith.subf %51, %54 : vector<8x8xf32>
    %56 = math.exp %55 : vector<8x8xf32>
    %cst_24 = arith.constant dense<0.000000e+00> : vector<8xf32>
    %57 = vector.multi_reduction <add>, %56, %cst_24 [1] : vector<8x8xf32> to vector<8xf32>
    %58 = vector.shape_cast %57 : vector<8xf32> to vector<8x1xf32>
    %59 = tpu.reciprocal %58 {approx = true} : vector<8x1xf32> -> vector<8x1xf32>
    %60 = vector.broadcast %59 : vector<8x1xf32> to vector<8x8xf32>
    %61 = arith.mulf %56, %60 : vector<8x8xf32>
    %cst_25 = arith.constant dense<0.000000e+00> : vector<8xf32>
    %62 = vector.multi_reduction <add>, %61, %cst_25 [0] : vector<8x8xf32> to vector<8xf32>
    %63 = vector.shape_cast %62 : vector<8xf32> to vector<1x8xf32>
    %cst_26 = arith.constant dense<0.000000e+00> : vector<8x8xf32>
    %64 = tpu.matmul %47, %48, %cst_26 {dimension_numbers = #tpu.dot_dimension_numbers<[1], [1], [0], [0], [0, 0, 1, 0], [], []>} : vector<8x8xf32>, vector<8x8xf32>, vector<8x8xf32> -> vector<8x8xf32>
    %65 = vector.broadcast %63 : vector<1x8xf32> to vector<8x8xf32>
    %66 = arith.addf %64, %65 : vector<8x8xf32>
    %cst_27 = arith.constant dense<0xFF800000> : vector<8xf32>
    %67 = vector.multi_reduction <maximumf>, %66, %cst_27 [1] : vector<8x8xf32> to vector<8xf32>
    %68 = vector.shape_cast %67 : vector<8xf32> to vector<8x1xf32>
    %69 = vector.broadcast %68 : vector<8x1xf32> to vector<8x8xf32>
    %70 = arith.subf %66, %69 : vector<8x8xf32>
    %71 = math.exp %70 : vector<8x8xf32>
    %cst_28 = arith.constant dense<0.000000e+00> : vector<8xf32>
    %72 = vector.multi_reduction <add>, %71, %cst_28 [1] : vector<8x8xf32> to vector<8xf32>
    %73 = vector.shape_cast %72 : vector<8xf32> to vector<8x1xf32>
    %74 = tpu.reciprocal %73 {approx = true} : vector<8x1xf32> -> vector<8x1xf32>
    %75 = vector.broadcast %74 : vector<8x1xf32> to vector<8x8xf32>
    %76 = arith.mulf %71, %75 : vector<8x8xf32>
    %cst_29 = arith.constant dense<0.000000e+00> : vector<8x8xf32>
    %77 = tpu.matmul %76, %50, %cst_29 {dimension_numbers = #tpu.dot_dimension_numbers<[1], [0], [0], [1], [0, 0, 1, 1], [], []>} : vector<8x8xf32>, vector<8x8xf32>, vector<8x8xf32> -> vector<8x8xf32>
    %78 = vector.extract_strided_slice %8 {offsets = [0, 16], sizes = [8, 8], strides = [1, 1]} : vector<8x32xf32> to vector<8x8xf32>
    %79 = vector.extract_strided_slice %13 {offsets = [0, 16], sizes = [8, 8], strides = [1, 1]} : vector<8x128xf32> to vector<8x8xf32>
    %80 = vector.extract_strided_slice %13 {offsets = [0, 48], sizes = [8, 8], strides = [1, 1]} : vector<8x128xf32> to vector<8x8xf32>
    %81 = vector.extract_strided_slice %13 {offsets = [0, 80], sizes = [8, 8], strides = [1, 1]} : vector<8x128xf32> to vector<8x8xf32>
    %82 = vector.extract_strided_slice %13 {offsets = [0, 112], sizes = [8, 8], strides = [1, 1]} : vector<8x128xf32> to vector<8x8xf32>
    %cst_30 = arith.constant dense<0.000000e+00> : vector<8x8xf32>
    %83 = tpu.matmul %78, %81, %cst_30 {dimension_numbers = #tpu.dot_dimension_numbers<[1], [1], [0], [0], [0, 0, 1, 0], [], []>} : vector<8x8xf32>, vector<8x8xf32>, vector<8x8xf32> -> vector<8x8xf32>
    %cst_31 = arith.constant dense<0xFF800000> : vector<8xf32>
    %84 = vector.multi_reduction <maximumf>, %83, %cst_31 [1] : vector<8x8xf32> to vector<8xf32>
    %85 = vector.shape_cast %84 : vector<8xf32> to vector<8x1xf32>
    %86 = vector.broadcast %85 : vector<8x1xf32> to vector<8x8xf32>
    %87 = arith.subf %83, %86 : vector<8x8xf32>
    %88 = math.exp %87 : vector<8x8xf32>
    %cst_32 = arith.constant dense<0.000000e+00> : vector<8xf32>
    %89 = vector.multi_reduction <add>, %88, %cst_32 [1] : vector<8x8xf32> to vector<8xf32>
    %90 = vector.shape_cast %89 : vector<8xf32> to vector<8x1xf32>
    %91 = tpu.reciprocal %90 {approx = true} : vector<8x1xf32> -> vector<8x1xf32>
    %92 = vector.broadcast %91 : vector<8x1xf32> to vector<8x8xf32>
    %93 = arith.mulf %88, %92 : vector<8x8xf32>
    %cst_33 = arith.constant dense<0.000000e+00> : vector<8xf32>
    %94 = vector.multi_reduction <add>, %93, %cst_33 [0] : vector<8x8xf32> to vector<8xf32>
    %95 = vector.shape_cast %94 : vector<8xf32> to vector<1x8xf32>
    %cst_34 = arith.constant dense<0.000000e+00> : vector<8x8xf32>
    %96 = tpu.matmul %79, %80, %cst_34 {dimension_numbers = #tpu.dot_dimension_numbers<[1], [1], [0], [0], [0, 0, 1, 0], [], []>} : vector<8x8xf32>, vector<8x8xf32>, vector<8x8xf32> -> vector<8x8xf32>
    %97 = vector.broadcast %95 : vector<1x8xf32> to vector<8x8xf32>
    %98 = arith.addf %96, %97 : vector<8x8xf32>
    %cst_35 = arith.constant dense<0xFF800000> : vector<8xf32>
    %99 = vector.multi_reduction <maximumf>, %98, %cst_35 [1] : vector<8x8xf32> to vector<8xf32>
    %100 = vector.shape_cast %99 : vector<8xf32> to vector<8x1xf32>
    %101 = vector.broadcast %100 : vector<8x1xf32> to vector<8x8xf32>
    %102 = arith.subf %98, %101 : vector<8x8xf32>
    %103 = math.exp %102 : vector<8x8xf32>
    %cst_36 = arith.constant dense<0.000000e+00> : vector<8xf32>
    %104 = vector.multi_reduction <add>, %103, %cst_36 [1] : vector<8x8xf32> to vector<8xf32>
    %105 = vector.shape_cast %104 : vector<8xf32> to vector<8x1xf32>
    %106 = tpu.reciprocal %105 {approx = true} : vector<8x1xf32> -> vector<8x1xf32>
    %107 = vector.broadcast %106 : vector<8x1xf32> to vector<8x8xf32>
    %108 = arith.mulf %103, %107 : vector<8x8xf32>
    %cst_37 = arith.constant dense<0.000000e+00> : vector<8x8xf32>
    %109 = tpu.matmul %108, %82, %cst_37 {dimension_numbers = #tpu.dot_dimension_numbers<[1], [0], [0], [1], [0, 0, 1, 1], [], []>} : vector<8x8xf32>, vector<8x8xf32>, vector<8x8xf32> -> vector<8x8xf32>
    %110 = vector.extract_strided_slice %8 {offsets = [0, 24], sizes = [8, 8], strides = [1, 1]} : vector<8x32xf32> to vector<8x8xf32>
    %111 = vector.extract_strided_slice %13 {offsets = [0, 24], sizes = [8, 8], strides = [1, 1]} : vector<8x128xf32> to vector<8x8xf32>
    %112 = vector.extract_strided_slice %13 {offsets = [0, 56], sizes = [8, 8], strides = [1, 1]} : vector<8x128xf32> to vector<8x8xf32>
    %113 = vector.extract_strided_slice %13 {offsets = [0, 88], sizes = [8, 8], strides = [1, 1]} : vector<8x128xf32> to vector<8x8xf32>
    %114 = vector.extract_strided_slice %13 {offsets = [0, 120], sizes = [8, 8], strides = [1, 1]} : vector<8x128xf32> to vector<8x8xf32>
    %cst_38 = arith.constant dense<0.000000e+00> : vector<8x8xf32>
    %115 = tpu.matmul %110, %113, %cst_38 {dimension_numbers = #tpu.dot_dimension_numbers<[1], [1], [0], [0], [0, 0, 1, 0], [], []>} : vector<8x8xf32>, vector<8x8xf32>, vector<8x8xf32> -> vector<8x8xf32>
    %cst_39 = arith.constant dense<0xFF800000> : vector<8xf32>
    %116 = vector.multi_reduction <maximumf>, %115, %cst_39 [1] : vector<8x8xf32> to vector<8xf32>
    %117 = vector.shape_cast %116 : vector<8xf32> to vector<8x1xf32>
    %118 = vector.broadcast %117 : vector<8x1xf32> to vector<8x8xf32>
    %119 = arith.subf %115, %118 : vector<8x8xf32>
    %120 = math.exp %119 : vector<8x8xf32>
    %cst_40 = arith.constant dense<0.000000e+00> : vector<8xf32>
    %121 = vector.multi_reduction <add>, %120, %cst_40 [1] : vector<8x8xf32> to vector<8xf32>
    %122 = vector.shape_cast %121 : vector<8xf32> to vector<8x1xf32>
    %123 = tpu.reciprocal %122 {approx = true} : vector<8x1xf32> -> vector<8x1xf32>
    %124 = vector.broadcast %123 : vector<8x1xf32> to vector<8x8xf32>
    %125 = arith.mulf %120, %124 : vector<8x8xf32>
    %cst_41 = arith.constant dense<0.000000e+00> : vector<8xf32>
    %126 = vector.multi_reduction <add>, %125, %cst_41 [0] : vector<8x8xf32> to vector<8xf32>
    %127 = vector.shape_cast %126 : vector<8xf32> to vector<1x8xf32>
    %cst_42 = arith.constant dense<0.000000e+00> : vector<8x8xf32>
    %128 = tpu.matmul %111, %112, %cst_42 {dimension_numbers = #tpu.dot_dimension_numbers<[1], [1], [0], [0], [0, 0, 1, 0], [], []>} : vector<8x8xf32>, vector<8x8xf32>, vector<8x8xf32> -> vector<8x8xf32>
    %129 = vector.broadcast %127 : vector<1x8xf32> to vector<8x8xf32>
    %130 = arith.addf %128, %129 : vector<8x8xf32>
    %cst_43 = arith.constant dense<0xFF800000> : vector<8xf32>
    %131 = vector.multi_reduction <maximumf>, %130, %cst_43 [1] : vector<8x8xf32> to vector<8xf32>
    %132 = vector.shape_cast %131 : vector<8xf32> to vector<8x1xf32>
    %133 = vector.broadcast %132 : vector<8x1xf32> to vector<8x8xf32>
    %134 = arith.subf %130, %133 : vector<8x8xf32>
    %135 = math.exp %134 : vector<8x8xf32>
    %cst_44 = arith.constant dense<0.000000e+00> : vector<8xf32>
    %136 = vector.multi_reduction <add>, %135, %cst_44 [1] : vector<8x8xf32> to vector<8xf32>
    %137 = vector.shape_cast %136 : vector<8xf32> to vector<8x1xf32>
    %138 = tpu.reciprocal %137 {approx = true} : vector<8x1xf32> -> vector<8x1xf32>
    %139 = vector.broadcast %138 : vector<8x1xf32> to vector<8x8xf32>
    %140 = arith.mulf %135, %139 : vector<8x8xf32>
    %cst_45 = arith.constant dense<0.000000e+00> : vector<8x8xf32>
    %141 = tpu.matmul %140, %114, %cst_45 {dimension_numbers = #tpu.dot_dimension_numbers<[1], [0], [0], [1], [0, 0, 1, 1], [], []>} : vector<8x8xf32>, vector<8x8xf32>, vector<8x8xf32> -> vector<8x8xf32>
    %142 = tpu.concatenate %45, %77, %109, %141 in 1 : vector<8x8xf32>, vector<8x8xf32>, vector<8x8xf32>, vector<8x8xf32> -> vector<8x32xf32>
    %c0_46 = arith.constant 0 : index
    %c0_47 = arith.constant 0 : index
    %143 = vector.load %arg7[%c0_46, %c0_47] : memref<32x32xf32, #tpu.memory_space<vmem>>, vector<32x32xf32>
    %cst_48 = arith.constant dense<0.000000e+00> : vector<8x32xf32>
    %144 = tpu.matmul %142, %143, %cst_48 {dimension_numbers = #tpu.dot_dimension_numbers<[1], [0], [0], [1], [0, 0, 1, 1], [], []>} : vector<8x32xf32>, vector<32x32xf32>, vector<8x32xf32> -> vector<8x32xf32>
    %c0_49 = arith.constant 0 : index
    %c0_50 = arith.constant 0 : index
    %145 = vector.load %arg8[%c0_49, %c0_50] : memref<1x32xf32, #tpu.memory_space<vmem>>, vector<1x32xf32>
    %146 = vector.broadcast %145 : vector<1x32xf32> to vector<8x32xf32>
    %147 = arith.addf %144, %146 : vector<8x32xf32>
    %c0_51 = arith.constant 0 : index
    %c0_52 = arith.constant 0 : index
    %c0_53 = arith.constant 0 : index
    %148 = vector.load %arg9[%c0_51, %c0_52, %c0_53] : memref<1x8x32xf32, #tpu.memory_space<vmem>>, vector<1x8x32xf32>
    %149 = vector.shape_cast %148 : vector<1x8x32xf32> to vector<8x32xf32>
    %150 = vector.shape_cast %147 : vector<8x32xf32> to vector<1x8x32xf32>
    tpu.vector_store %arg9[%c0_51, %c0_52, %c0_53], %150 {strides = array<i32>} : memref<1x8x32xf32, #tpu.memory_space<vmem>>, vector<1x8x32xf32>,
    return
  }
  func.func @transform_0(%arg0: i32) -> (i32, i32, i32) {
    %c0_i32 = arith.constant 0 : i32
    %c0_i32_0 = arith.constant 0 : i32
    %c0_i32_1 = arith.constant 0 : i32
    return %arg0, %c0_i32, %c0_i32_0 : i32, i32, i32
  }
  func.func @transform_1(%arg0: i32) -> (i32, i32, i32) {
    %c0_i32 = arith.constant 0 : i32
    %c0_i32_0 = arith.constant 0 : i32
    %c0_i32_1 = arith.constant 0 : i32
    return %arg0, %c0_i32, %c0_i32_0 : i32, i32, i32
  }
  func.func @transform_2(%arg0: i32) -> (i32, i32) {
    %c0_i32 = arith.constant 0 : i32
    %c0_i32_0 = arith.constant 0 : i32
    %c0_i32_1 = arith.constant 0 : i32
    return %c0_i32, %c0_i32_0 : i32, i32
  }
  func.func @transform_3(%arg0: i32) -> (i32, i32) {
    %c0_i32 = arith.constant 0 : i32
    %c0_i32_0 = arith.constant 0 : i32
    %c0_i32_1 = arith.constant 0 : i32
    return %c0_i32, %c0_i32_0 : i32, i32
  }
  func.func @transform_4(%arg0: i32) -> (i32, i32) {
    %c0_i32 = arith.constant 0 : i32
    %c0_i32_0 = arith.constant 0 : i32
    %c0_i32_1 = arith.constant 0 : i32
    return %c0_i32, %c0_i32_0 : i32, i32
  }
  func.func @transform_5(%arg0: i32) -> (i32, i32) {
    %c0_i32 = arith.constant 0 : i32
    %c0_i32_0 = arith.constant 0 : i32
    %c0_i32_1 = arith.constant 0 : i32
    return %c0_i32, %c0_i32_0 : i32, i32
  }
  func.func @transform_6(%arg0: i32) -> (i32, i32) {
    %c0_i32 = arith.constant 0 : i32
    %c0_i32_0 = arith.constant 0 : i32
    %c0_i32_1 = arith.constant 0 : i32
    return %c0_i32, %c0_i32_0 : i32, i32
  }
  func.func @transform_7(%arg0: i32) -> (i32, i32) {
    %c0_i32 = arith.constant 0 : i32
    %c0_i32_0 = arith.constant 0 : i32
    %c0_i32_1 = arith.constant 0 : i32
    return %c0_i32, %c0_i32_0 : i32, i32
  }
  func.func @transform_8(%arg0: i32) -> (i32, i32, i32) {
    %c0_i32 = arith.constant 0 : i32
    %c0_i32_0 = arith.constant 0 : i32
    %c0_i32_1 = arith.constant 0 : i32
    return %arg0, %c0_i32, %c0_i32_0 : i32, i32, i32
  }
}

</mosaic_0001>

<bundles_post_ra>
// kernel: tpu_custom_call.1
= control target key start
LH: loop header
LB: loop body
LE: loop exit
PB: predicated region body
PF: predicated region fallthrough
CT: control target
= control target key end

     0   :  { %s1854_s0 = inlined_call_operand.hbm [shape: f32[2,8,32], index: 0, kind: input, shape index: {}]   ;;  %s1855_s1 = inlined_call_operand.hbm [shape: f32[2,8,32], index: 1, kind: input, shape index: {}]   ;;  %s1856_s2 = inlined_call_operand.hbm [shape: f32[32,32], index: 2, kind: input, shape index: {}]   ;;  %s1857_s3 = inlined_call_operand.vmem [shape: f32[1,32], index: 3, kind: input, shape index: {}]   ;;  %s1858_s4 = inlined_call_operand.hbm [shape: f32[32,128], index: 4, kind: input, shape index: {}]   ;;  %s1859_s5 = inlined_call_operand.vmem [shape: f32[1,128], index: 5, kind: input, shape index: {}]   ;;  %s1860_s6 = inlined_call_operand.hbm [shape: f32[32,32], index: 6, kind: input, shape index: {}]   ;;  %s1861_s7 = inlined_call_operand.vmem [shape: f32[1,32], index: 7, kind: input, shape index: {}]   ;;  %s1862_s8 = inlined_call_operand.hbm [shape: f32[2,8,32], index: 8, kind: output, shape index: {}]  }
   0x1   :  { %1867 = sst [smem:[#allocation21_spill]] %s1856_s2 }
   0x2   :  { %1868 = sst [smem:[#allocation22_spill]] %s1858_s4 }
   0x3   :  { %1869 = sst [smem:[#allocation23_spill]] %s1860_s6 }
   0x4   :  { %13 = vsyncpa [#allocation3], 0 }
   0x5   :  { %15 = vsyncpa [#allocation3 + $0x1], 0 }
   0x6   :  { %16 = vsyncpa [#allocation6], 0 }
   0x7   :  { %18 = vsyncpa [#allocation6 + $0x1], 0 }
   0x8   :  { %19 = vsyncpa [#allocation9], 0 }
   0x9   :  { %20 = vsyncpa [#allocation4], 0 }
   0xa   :  { %22 = vsyncpa [#allocation4 + $0x1], 0  ;;  %s1578_s27 = smov 0   ;;  %s1580_s28 = smov 0  }
   0xb   :  { %s1582_s29 = smov 0   ;;  %s1584_s30 = smov 0  }
   0xc LB: > { %1870 = sst [smem:[#allocation17_spill]] %s1507_s29  ;;  %s1602_s12 = sadd.s32 4294967295, %s1511_s30   ;;  %s1511_s30 = sphi %s1584_s30, %s1886_s30   ;;  %s1507_s29 = sphi %s1582_s29, %s1888_s29   ;;  %s1503_s28 = sphi %s1580_s28, %s1890_s28   ;;  %s1499_s27 = sphi %s1578_s27, %s1889_s27  }
   0xd   : > { %1871 = sst [smem:[#allocation18_spill]] %s1511_s30  ;;  %p1106_p0 = scmp.ge.s32.totalorder %s1511_s30, 1 }
   0xe   : > { %s1872_s2 = sld [smem:[#allocation21_spill]]  ;;  %p49_p1 = scmp.eq.s32.totalorder %s1602_s12, 0 }
   0xf   : > { %p237_p2 = scmp.lt.s32.totalorder %s1511_s30, 3  ;;  %s1513_s14 = smov [#allocation7]  }
  0x10   : > { %s250_s15 = sshll.u32 %s1513_s14, 4  ;;  %s1874_s4 = sld [smem:[#allocation22_spill]]  ;;  %s251_s15 = int_to_ptr.vmem [resolvable:$true] %s250_s15 }
  0x11   : > { %p1607_p3 = pnand %p1106_p0, %p237_p2  ;;  %s1876_s6 = sld [smem:[#allocation23_spill]] }
  0x12   : > { %s1514_s23 = smov [#allocation8]   ;;  %s1515_s25 = smov 128  }
  0x13   : > { %p1167_p4 = pneg %p1607_p3  ;;  %s267_s24 = sshll.u32 %s1514_s23, 4  ;;  %s268_s24 = int_to_ptr.vmem [resolvable:$true] %s267_s24 }
  0x14   : > { %s248_s11 = sshll.u32 %s1872_s2, 4  ;;  %s1516_s26 = smov 8   ;;  %s249_s11 = int_to_ptr.hbm [resolvable:$true] %s248_s11 }
  0x15   : > { %p1619_p6 = pnand %p1167_p4, %p49_p1  ;;  %s1517_s9 = smov [#allocation10]  }
  0x16   : > { %s265_s18 = sshll.u32 %s1874_s4, 4  ;;  %s284_s10 = sshll.u32 %s1517_s9, 4  ;;  %s266_s18 = int_to_ptr.hbm [resolvable:$true] %s265_s18  ;;  %s285_s10 = int_to_ptr.vmem [resolvable:$true] %s284_s10 }
  0x17   : > { %s282_s22 = sshll.u32 %s1876_s6, 4  ;;  %s1105_s14 = sadd.s32 4294967294, %s1511_s30   ;;  %s283_s22 = int_to_ptr.hbm [resolvable:$true] %s282_s22 }
  0x18   : > { %1170 = dma.hbm_to_vmem [thread:$0]  (!%p1619_p6), %s249_s11, 512, %s251_s15, [#allocation6], %s1515_s25, %s1515_s25, %s1516_s26  }
  0x19   : > { %1173 = dma.hbm_to_vmem [thread:$0]  (!%p1619_p6), %s266_s18, 512, %s268_s24, [#allocation9], %s1515_s25, %s1515_s25, %s1516_s26  }
  0x1a   : > { %1176 = dma.hbm_to_vmem [thread:$0]  (!%p1619_p6), %s283_s22, 512, %s285_s10, [#allocation9], %s1515_s25, %s1515_s25, %s1516_s26  }
  0x1b   : > { %s1634_s16 = sadd.s32 1, %s1511_s30   ;;  %s35_s17 = sadd.s32 1, %s1507_s29 }
  0x1c   : > { %1877 = sst [smem:[#allocation19_spill]] %s1634_s16  ;;  %s32_s11 = ssub.s32 %s1511_s30, %s1634_s16 }
  0x1d   : > { %p42_p7 = scmp.ne.s32.totalorder %s1507_s29, %s1503_s28  ;;  %p33_p8 = scmp.eq.s32.totalorder %s32_s11, 0 }
  0x1e   : > { %p43_p9 = scmp.eq.s32.totalorder %s1511_s30, 0  ;;  %p48_p10 = scmp.ne.s32.totalorder %s1503_s28, %s1499_s27 }
  0x1f   : > { %p224_p11 = scmp.eq.s32.totalorder %s1602_s12, 1  ;;  %p230_p2 = scmp.eq.s32.totalorder %s1105_s14, 1 }
  0x20   : > { %s1646_s15 = scalar_select %p33_p8, %s1507_s29, %s35_s17  }
  0x21   : > { %p1648_p12 = por %p43_p9, %p42_p7  ;;  %p1654_p13 = por %p49_p1, %p48_p10 }
  0x22   : > { %1878 = sst [smem:[#allocation20_spill]] %s1646_s15  ;;  %p1658_p0 = por %p224_p11, %p42_p7 }
  0x23   : > { %p1191_p4 = scmp.lt.s32.totalorder %s1511_s30, 2  ;;  %s301_s21 = sand.u32 1, %s1507_s29  }
  0x24   : > { %p1664_p6 = por %p230_p2, %p48_p10  ;;  %s1111_s23 = sshll.u32 %s301_s21, 3 }
  0x25   : > { %s1112_s24 = sshll.u32 %s1511_s30, 3  ;;  %s305_s17 = scalar_lea.vmem [#allocation2], %s1111_s23 }
  0x26   : > { %s309_s9 = scalar_lea.hbm %s1854_s0, %s1112_s24  ;;  %s313_s11 = sshll.u32 %s305_s17, 4  ;;  %s314_s11 = int_to_ptr.vmem [resolvable:$true] %s313_s11 }
  0x27   : > { %s311_s10 = sshll.u32 %s309_s9, 4  ;;  %p1674_p7 = pnand %p1191_p4, %p1648_p12  ;;  %s312_s10 = int_to_ptr.hbm [resolvable:$true] %s311_s10 }
  0x28   : > { %s328_s6 = scalar_lea.hbm %s1855_s1, %s1112_s24  ;;  %s320_s15 = sand.u32 1, %s1511_s30  }
  0x29   : > { %s302_s29 = scalar_lea.sflag [#allocation3], %s301_s21  ;;  %s1373_s25 = sshra.s32 %s312_s10, 4  ;;  %s1374_s25 = int_to_ptr.hbm [resolvable:$true] %s1373_s25 }
  0x2a   : > { %s1375_s26 = scalar_lea.hbm %s1374_s25, 8  ;;  %p1377_p9 = pneg %p1674_p7 }
  0x2b   : > { %p1376_p8 = scmp.ne.s32.totalorder %s1374_s25, %s1375_s26  ;;  %s1380_s17 = scalar_lea.hbm %s1854_s0, 16 }
  0x2c   : > { %p1381_p12 = scmp.lt.s32.totalorder %s1374_s25, %s1854_s0  ;;  %p1382_p2 = scmp.lt.s32.totalorder %s1380_s17, %s1375_s26 }
  0x2d   : > { %p1378_p10 = pnand %p1377_p9, %p1376_p8 }
  0x2e   : > { %p1383_p4 = por %p1382_p2, %p1381_p12 }
  0x2f   : > { %p1379_p11 = pneg %p1378_p10 }
  0x31   : > { %p1384_p5 = pnand %p1383_p4, %p1379_p11 }
  0x33   : > { %1387 = shalt.err (!%p1384_p5)
}
  0x34   : > { %1180 = dma.hbm_to_vmem [thread:$0]  (!%p1674_p7), %s312_s10, 128, %s314_s11, %s302_s29  }
  0x35   : > { %s330_s21 = sshll.u32 %s328_s6, 4  ;;  %s324_s24 = scalar_lea.vmem [#allocation5], %s1111_s23  ;;  %s331_s21 = int_to_ptr.hbm [resolvable:$true] %s330_s21 }
  0x36   : > { %s332_s16 = sshll.u32 %s324_s24, 4  ;;  %s321_s30 = scalar_lea.sflag [#allocation6], %s320_s15  ;;  %s333_s16 = int_to_ptr.vmem [resolvable:$true] %s332_s16 }
  0x37   : > { %s1403_s18 = sshra.s32 %s331_s21, 4  ;;  %s1410_s17 = scalar_lea.hbm %s1855_s1, 16  ;;  %s1404_s18 = int_to_ptr.hbm [resolvable:$true] %s1403_s18 }
  0x38   : > { %s1405_s9 = scalar_lea.hbm %s1404_s18, 8  ;;  %p1411_p5 = scmp.lt.s32.totalorder %s1404_s18, %s1855_s1 }
  0x39   : > { %p1406_p8 = scmp.ne.s32.totalorder %s1404_s18, %s1405_s9  ;;  %p1412_p11 = scmp.lt.s32.totalorder %s1410_s17, %s1405_s9 }
  0x3b   : > { %p1408_p10 = pnand %p1406_p8, %p1377_p9  ;;  %p1413_p2 = por %p1412_p11, %p1411_p5 }
  0x3d   : > { %p1409_p12 = pneg %p1408_p10 }
  0x3f   : > { %p1414_p4 = pnand %p1413_p2, %p1409_p12 }
  0x41   : > { %1417 = shalt.err (!%p1414_p4)
}
  0x42   : > { %1183 = dma.hbm_to_vmem [thread:$0]  (!%p1674_p7), %s331_s21, 128, %s333_s16, %s321_s30  }
  0x43   : > { %341 = sbr.rel (%p1607_p3) target bundleno = 2048 (0x800), region = 52  ;;  %s1709_s6 = sand.u32 (!%p1607_p3), 1, %s1503_s28  }
  0x44   : > { %s1712_s15 = sshll.u32 (!%p1607_p3), %s1709_s6, 3  ;;  %s344_s23 = scalar_lea.sflag (!%p1607_p3), [#allocation3], %s1709_s6 }
  0x45   : > { %s347_s10 = scalar_lea.vmem (!%p1607_p3), [#allocation2], %s1712_s15 }
  0x48   : > { %1478 = dma.done.wait (%p1654_p13), %s344_s23, 128  }
  0x49   : > { %1480 = vsyncadd (%p1654_p13), %s344_s23, 4294967168  ;;  %s353_s30 = sand.u32 1, %s1602_s12   ;;  %s357_s16 = scalar_lea.vmem [#allocation5], %s1712_s15 }
  0x4a   : > { %s354_s13 = scalar_lea.sflag [#allocation6], %s353_s30 }
  0x4b   : > { %1482 = dma.done.wait (%p1654_p13), %s354_s13, 128  }
  0x4c   : > { %1484 = vsyncadd (%p1654_p13), %s354_s13, 4294967168 }
  0x4d   : > { %1486 = dma.done.wait (%p49_p1), [#allocation6], 512  }
  0x4e   : > { %1488 = vsyncadd (%p49_p1), [#allocation6], 4294966784 }
  0x4f   : > { %1490 = dma.done.wait (%p49_p1), [#allocation9], 1024  }
  0x50   : > { %1492 = vsyncadd (%p49_p1), [#allocation9], 4294966272  ;;  %v448_v0 = vld [vmem:[#allocation8 + $0x18] sm:$0xff]  ;;  %v447_v1 = vld [vmem:[#allocation8 + $0x10] sm:$0xff]  ;;  %vm421_vm0 = vcmask 261120   ;;  %s1518_s14 = smov 88  }
  0x51   : > { %468 = vmatpush.msra.mxu1 %v448_v0  ;;  %v416_v2 = vld [vmem:[#allocation7 + $0x18] sm:$0xff]  ;;  %v446_v3 = vld [vmem:[#allocation8 + $0x8] sm:$0xff]  ;;  %v415_v4 = vld [vmem:[#allocation7 + $0x10] sm:$0xff]  ;;  %s1519_s4 = smov 56   ;;  %s1520_s18 = smov 96   ;;  %vm479_vm1 = vcmask 64512  }
  0x52   : > { %437 = vmatpush.msra.mxu0 %v416_v2  ;;  %v414_v5 = vld [vmem:[#allocation7 + $0x8] sm:$0xff]  ;;  %v445_v6 = vld [vmem:[#allocation8] sm:$0xff]  ;;  %v412_v7 = vld [vmem:[%s357_s16] sm:$0xff]  ;;  %s1521_s9 = smov 120   ;;  %s1522_s25 = smov 64   ;;  %vm932_vm2 = vcmask 130048  }
  0x53   : > { %469 = vmatpush.msra.mxu1 %v447_v1  ;;  %v413_v8 = vld [vmem:[#allocation7] sm:$0xff]  ;;  %s1523_s26 = smov 24   ;;  %s1524_s17 = smov 48   ;;  %vm934_vm3 = vcmask 195584  }
  0x54   : > { %438 = vmatpush.msra.mxu0 %v415_v4  ;;  %v411_v9 = vld [vmem:[%s347_s10] sm:$0xff]  ;;  %s1525_s2 = smov 32   ;;  %s1526_s29 = smov 40  }
  0x55   : > { %470 = vmatpush.msra.mxu1 %v446_v3  ;;  %v1248_v10 = vld [vmem:[%s1859_s5] ss:$0 sm:$0xff]  ;;  %s1527_s23 = smov 72   ;;  %s1528_s10 = smov 112  }
  0x56   : > { %439 = vmatpush.msra.mxu0 %v414_v5  ;;  %v1249_v13 = vld [vmem:[%s1857_s3] ss:$0 sm:$0xff]  ;;  %s1529_s30 = smov 104   ;;  %s1530_s13 = smov 80  }
  0x57   : > { %471 = vmatpush.msra.mxu1 %v445_v6  ;;  %s1531_s16 = smov 8   ;;  %s1532_s19 = smov 16  }
  0x58   : > { %1123 = vmatmul.msk.f32.vlgmr.msra.gmra.mxu1 %vm421_vm0, %v412_v7  ;;  %440 = vmatpush.msra.mxu0 %v413_v8  ;;  %s1146_s11 = sshll.u32 %s1602_s12, 3 }
  0x59   : > { %1122 = vmatmul.msk.f32.vlgmr.msra.gmra.mxu0 %vm421_vm0, %v411_v9  ;;  %s979_s21 = scalar_lea.hbm %s1862_s8, %s1146_s11 }
  0xd5   : > { %v473_v11 = vpop.f32.mrf.mxu1 }
  0xd6   : > { %v1739_v12 = vadd.f32 %v1248_v10, %v473_v11  ;;  %v442_v14 = vpop.f32.mrf.mxu0 }
  0xd7   : > { %v1747_v15 = vadd.f32 %v1249_v13, %v442_v14 }
  0xd8   : > { %634 = vrot.lane.b32.xlu2 %v1739_v12, %s1518_s14  ;;  %588 = vrot.lane.b32.xlu1 %v1739_v12, %s1519_s4 }
  0xd9   : > { %523 = vrot.lane.b32.xlu0 %v1739_v12, %s1520_s18 }
  0xe0   : > { %632 = vrot.lane.b32.xlu2 %v1739_v12, %s1521_s9  ;;  %586 = vrot.lane.b32.xlu1 %v1747_v15, %s1521_s9  ;;  %s410_s9 = scalar_lea.vmem [#allocation11], %s1712_s15  ;;  %s1453_s15 = scalar_lea.hbm %s1862_s8, 16 }
  0xe1   : > { %477 = vrot.lane.b32.xlu0 %v1739_v12, %s1522_s25  ;;  %s981_s25 = sshll.u32 %s410_s9, 4  ;;  %s982_s25 = int_to_ptr.vmem [resolvable:$true] %s981_s25 }
 0x132   : > { %v635_v16 = vpop.permute.xlu2 %634 }
 0x133   : > { %1131 = vmatpush.xpose.msk.msrb.mxu0 %vm479_vm1, %v635_v16 }
 0x13a   : > { %v633_v17 = vpop.permute.xlu2 %632 }
 0x13b   : > { %1132 = vmatmul.msk.f32.vlgmr.msrb.gmra.mxu0 %vm479_vm1, %v633_v17 }
 0x14a   : > { %v589_v18 = vpop.permute.xlu1 %588 }
 0x14b   : > { %v524_v19 = vpop.permute.xlu0 %523 }
 0x14c   : > { %1126 = vmatpush.xpose.msk.msra.mxu3 %vm479_vm1, %v524_v19 }
 0x14f   : > { %1127 = vmatmul.msk.f32.vlgmr.msra.gmra.mxu3 %vm479_vm1, %v1739_v12 }
 0x150   : > { %1129 = vmatpush.xpose.msk.msrb.mxu3 %vm479_vm1, %v589_v18 }
 0x152   : > { %v587_v21 = vpop.permute.xlu1 %586 }
 0x153   : > { %v478_v20 = vpop.permute.xlu0 %477 }
 0x154   : > { %1124 = vmatpush.xpose.msk.msra.mxu2 %vm479_vm1, %v478_v20 }
 0x157   : > { %1125 = vmatmul.msk.f32.vlgmr.msra.gmra.mxu2 %vm479_vm1, %v1747_v15  ;;  %1130 = vmatmul.msk.f32.vlgmr.msrb.gmra.mxu3 %vm479_vm1, %v587_v21 }
 0x1b8   : > { %v657_v60 = vpop.f32.mrf.mxu0 }
 0x1d2   : > { %v546_v22 = vpop.f32.mrf.mxu3 }
 0x1da   : > { %v502_v23 = vpop.f32.mrf.mxu2  ;;  %v611_v24 = vpop.f32.mrf.mxu3 }
 0x1db   : > { %v614_v25 = vsel %vm479_vm1, %v611_v24, -inf  ;;  %v505_v26 = vsel %vm479_vm1, %v502_v23, -inf }
 0x1dc   : > { %615 = vmax.xlane.f32.xlu1 %v614_v25  ;;  %506 = vmax.xlane.f32.xlu0 %v505_v26 }
 0x24f   : > { %v507_v27 = vpop.xlane.xlu0 %506  ;;  %v616_v28 = vpop.xlane.xlu1 %615 }
 0x250   : > { %v508_v29 = vsub.f32 %v502_v23, %v507_v27  ;;  %v617_v31 = vsub.f32 %v611_v24, %v616_v28 }
 0x252   : > { %v509_v30 = vmul.f32 1.442695, %v508_v29  ;;  %v618_v32 = vmul.f32 1.442695, %v617_v31 }
 0x254   : > { %1251 = vpow2.f32 %v509_v30 }
 0x255   : > { %1253 = vpow2.f32 %v618_v32 }
 0x25a   : > { %v1252_v33 = vpop.eup %1251 }
 0x25b   : > { %v511_v34 = vsel %vm479_vm1, %v1252_v33, 0.0  ;;  %v1254_v35 = vpop.eup %1253 }
 0x25c   : > { %512 = vadd.xlane.f32.xlu2 %v511_v34  ;;  %v620_v36 = vsel %vm479_vm1, %v1254_v35, 0.0 }
 0x264   : > { %621 = vadd.xlane.f32.xlu2 %v620_v36 }
 0x27c   : > { %671 = vrot.lane.b32.xlu2 %v1739_v12, %s1523_s26 }
 0x2cf   : > { %v513_v37 = vpop.xlane.xlu2 %512 }
 0x2d0   : > { %1255 = vrcp.f32 %v513_v37 }
 0x2d6   : > { %v1256_v38 = vpop.eup %1255 }
 0x2d7   : > { %v515_v39 = vmul.f32 %v1256_v38, %v1252_v33  ;;  %v622_v40 = vpop.xlane.xlu2 %621 }
 0x2d8   : > { %1257 = vrcp.f32 %v622_v40 }
 0x2d9   : > { %v516_v41 = vsel %vm479_vm1, %v515_v39, 0.0 }
 0x2da   : > { %v517_v42 = vrot.slane %v516_v41, 4 }
 0x2dc   : > { %v518_v43 = vadd.f32 %v517_v42, %v516_v41 }
 0x2de   : > { %v1258_v44 = vpop.eup %1257  ;;  %v519_v45 = vrot.slane %v518_v43, 2 }
 0x2df   : > { %v624_v46 = vmul.f32 %v1258_v44, %v1254_v35  ;;  %v672_v47 = vpop.permute.xlu2 %671 }
 0x2e0   : > { %692 = vmatpush.msrb.mxu1 %v672_v47  ;;  %v520_v48 = vadd.f32 %v519_v45, %v518_v43 }
 0x2e1   : > { %v625_v49 = vsel %vm479_vm1, %v624_v46, 0.0 }
 0x2e2   : > { %v521_v50 = vrot.slane %v520_v48, 1  ;;  %v626_v51 = vrot.slane %v625_v49, 4 }
 0x2e4   : > { %v522_v52 = vadd.f32 %v521_v50, %v520_v48  ;;  %v627_v53 = vadd.f32 %v626_v51, %v625_v49 }
 0x2e6   : > { %v547_v54 = vadd.f32 %v546_v22, %v522_v52  ;;  %v628_v55 = vrot.slane %v627_v53, 2 }
 0x2e8   : > { %v549_v56 = vsel %vm479_vm1, %v547_v54, -inf  ;;  %v629_v57 = vadd.f32 %v628_v55, %v627_v53 }
 0x2e9   : > { %550 = vmax.xlane.f32.xlu0 %v549_v56 }
 0x2ea   : > { %v630_v58 = vrot.slane %v629_v57, 1 }
 0x2ec   : > { %v631_v59 = vadd.f32 %v630_v58, %v629_v57 }
 0x2ee   : > { %v658_v61 = vadd.f32 %v657_v60, %v631_v59 }
 0x2f0   : > { %v660_v62 = vsel %vm479_vm1, %v658_v61, -inf }
 0x2f1   : > { %661 = vmax.xlane.f32.xlu1 %v660_v62 }
 0x2fd   : > { %699 = vrot.lane.b32.xlu0 %v1739_v12, %s1524_s17  ;;  %s969_s17 = scalar_lea.sflag [#allocation4], %s1709_s6 }
 0x30a   : > { %560 = vrot.lane.b32.xlu1 %v1739_v12, %s1525_s2 }
 0x312   : > { %810 = vrot.lane.b32.xlu1 %v1739_v12, %s1526_s29 }
 0x31a   : > { %856 = vrot.lane.b32.xlu1 %v1739_v12, %s1527_s23 }
 0x322   : > { %743 = vrot.lane.b32.xlu1 %v1739_v12, %s1528_s10 }
 0x35c   : > { %v551_v63 = vpop.xlane.xlu0 %550 }
 0x35d   : > { %v552_v0 = vsub.f32 %v547_v54, %v551_v63 }
 0x35f   : > { %v553_v1 = vmul.f32 1.442695, %v552_v0 }
 0x361   : > { %1259 = vpow2.f32 %v553_v1 }
 0x364   : > { %v662_v2 = vpop.xlane.xlu1 %661 }
 0x365   : > { %v663_v3 = vsub.f32 %v658_v61, %v662_v2 }
 0x367   : > { %v1260_v4 = vpop.eup %1259  ;;  %v664_v5 = vmul.f32 1.442695, %v663_v3 }
 0x368   : > { %v555_v6 = vsel %vm479_vm1, %v1260_v4, 0.0 }
 0x369   : > { %1261 = vpow2.f32 %v664_v5  ;;  %556 = vadd.xlane.f32.xlu2 %v555_v6 }
 0x36f   : > { %v1262_v7 = vpop.eup %1261  ;;  %v700_v10 = vpop.permute.xlu0 %699 }
 0x370   : > { %v666_v8 = vsel %vm479_vm1, %v1262_v7, 0.0 }
 0x371   : > { %667 = vadd.xlane.f32.xlu0 %v666_v8 }
 0x37c   : > { %v561_v9 = vpop.permute.xlu1 %560 }
 0x37d   : > { %581 = vmatpush.msrb.mxu2 %v561_v9 }
 0x37f   : > { %1134 = vmatpush.xpose.msk.msra.mxu2 %vm479_vm1, %v700_v10 }
 0x381   : > { %808 = vrot.lane.b32.xlu2 %v1747_v15, %s1529_s30 }
 0x384   : > { %v811_v11 = vpop.permute.xlu1 %810 }
 0x385   : > { %697 = vrot.lane.b32.xlu0 %v1747_v15, %s1528_s10  ;;  %1139 = vmatpush.xpose.msk.msra.mxu1 %vm479_vm1, %v811_v11 }
 0x389   : > { %745 = vrot.lane.b32.xlu2 %v1739_v12, %s1530_s13 }
 0x38c   : > { %v857_v19 = vpop.permute.xlu1 %856 }
 0x38d   : > { %854 = vrot.lane.b32.xlu0 %v1739_v12, %s1529_s30 }
 0x394   : > { %v744_v22 = vpop.permute.xlu1 %743 }
 0x3dc   : > { %v557_v13 = vpop.xlane.xlu2 %556 }
 0x3dd   : > { %1263 = vrcp.f32 %v557_v13 }
 0x3e3   : > { %v1264_v14 = vpop.eup %1263 }
 0x3e4   : > { %v668_v16 = vpop.xlane.xlu0 %667  ;;  %v809_v17 = vpop.permute.xlu2 %808  ;;  %v559_v18 = vmul.f32 %v1264_v14, %v1260_v4 }
 0x3e5   : > { %1265 = vrcp.f32 %v668_v16 }
 0x3e6   : > { %1128 = vmatmul.msk.f32.vlgmr.msrb.gmra.mxu2 %vm479_vm1, %v559_v18 }
 0x3e7   : > { %1141 = vmatpush.xpose.msk.msrb.mxu2 %vm479_vm1, %v857_v19 }
 0x3eb   : > { %v1266_v15 = vpop.eup %1265 }
 0x3ec   : > { %v746_v20 = vpop.permute.xlu2 %745  ;;  %v670_v21 = vmul.f32 %v1266_v15, %v1262_v7 }
 0x3ed   : > { %1136 = vmatpush.xpose.msk.msra.mxu3 %vm479_vm1, %v746_v20 }
 0x3ee   : > { %1133 = vmatmul.msk.f32.vlgmr.msrb.gmra.mxu1 %vm479_vm1, %v670_v21 }
 0x3f0   : > { %1137 = vmatmul.msk.f32.vlgmr.msra.gmra.mxu3 %vm479_vm1, %v744_v22 }
 0x3f6   : > { %1140 = vmatmul.msk.f32.vlgmr.msra.gmra.mxu1 %vm479_vm1, %v809_v17 }
 0x3f7   : > { %v698_v23 = vpop.permute.xlu0 %697 }
 0x3f8   : > { %1135 = vmatmul.msk.f32.vlgmr.msra.gmra.mxu2 %vm479_vm1, %v698_v23  ;;  %v939_v23 = vld [vmem:[#allocation10 + $0x18] sm:$0xff] }
 0x3ff   : > { %v855_v24 = vpop.permute.xlu0 %854 }
 0x400   : > { %1142 = vmatmul.msk.f32.vlgmr.msrb.gmra.mxu2 %vm479_vm1, %v855_v24  ;;  %v938_v24 = vld [vmem:[#allocation10 + $0x10] sm:$0xff] }
 0x469   : > { %v1795_v26 = vpop.f32.mrf.mxu2 }
 0x46b   : > { %v1793_v25 = vpop.f32.mrf.mxu1 }
 0x473   : > { %v833_v27 = vpop.f32.mrf.mxu1  ;;  %v768_v0 = vpop.f32.mrf.mxu3 }
 0x474   : > { %v836_v28 = vsel %vm479_vm1, %v833_v27, -inf }
 0x475   : > { %837 = vmax.xlane.f32.xlu0 %v836_v28 }
 0x47b   : > { %v722_v29 = vpop.f32.mrf.mxu2 }
 0x47c   : > { %v725_v30 = vsel %vm479_vm1, %v722_v29, -inf }
 0x47d   : > { %726 = vmax.xlane.f32.xlu2 %v725_v30 }
 0x483   : > { %v879_v57 = vpop.f32.mrf.mxu2 }
 0x4e8   : > { %v838_v31 = vpop.xlane.xlu0 %837 }
 0x4e9   : > { %v839_v32 = vsub.f32 %v833_v27, %v838_v31  ;;  %v936_v27 = vld [vmem:[#allocation10] sm:$0xff] }
 0x4eb   : > { %v840_v33 = vmul.f32 1.442695, %v839_v32 }
 0x4ed   : > { %1267 = vpow2.f32 %v840_v33 }
 0x4f0   : > { %v727_v34 = vpop.xlane.xlu2 %726 }
 0x4f1   : > { %v728_v35 = vsub.f32 %v722_v29, %v727_v34  ;;  %v1250_v34 = vld [vmem:[%s1861_s7] ss:$0 sm:$0xff] }
 0x4f3   : > { %v1268_v36 = vpop.eup %1267  ;;  %v729_v37 = vmul.f32 1.442695, %v728_v35 }
 0x4f4   : > { %v842_v38 = vsel %vm479_vm1, %v1268_v36, 0.0 }
 0x4f5   : > { %1269 = vpow2.f32 %v729_v37  ;;  %843 = vadd.xlane.f32.xlu1 %v842_v38 }
 0x4fb   : > { %v1270_v39 = vpop.eup %1269 }
 0x4fc   : > { %v731_v40 = vsel %vm479_vm1, %v1270_v39, 0.0 }
 0x4fd   : > { %732 = vadd.xlane.f32.xlu0 %v731_v40 }
 0x568   : > { %v844_v41 = vpop.xlane.xlu1 %843 }
 0x569   : > { %1271 = vrcp.f32 %v844_v41 }
 0x56f   : > { %v1272_v42 = vpop.eup %1271 }
 0x570   : > { %v846_v43 = vmul.f32 %v1272_v42, %v1268_v36  ;;  %v733_v44 = vpop.xlane.xlu0 %732 }
 0x571   : > { %1273 = vrcp.f32 %v733_v44 }
 0x572   : > { %v847_v45 = vsel %vm479_vm1, %v846_v43, 0.0 }
 0x573   : > { %v848_v46 = vrot.slane %v847_v45, 4 }
 0x575   : > { %v849_v47 = vadd.f32 %v848_v46, %v847_v45 }
 0x577   : > { %v1274_v48 = vpop.eup %1273  ;;  %v850_v49 = vrot.slane %v849_v47, 2 }
 0x578   : > { %v735_v50 = vmul.f32 %v1274_v48, %v1270_v39 }
 0x579   : > { %v851_v51 = vadd.f32 %v850_v49, %v849_v47 }
 0x57a   : > { %v736_v52 = vsel %vm479_vm1, %v735_v50, 0.0 }
 0x57b   : > { %v852_v53 = vrot.slane %v851_v51, 1  ;;  %v737_v54 = vrot.slane %v736_v52, 4 }
 0x57d   : > { %v853_v55 = vadd.f32 %v852_v53, %v851_v51  ;;  %v738_v56 = vadd.f32 %v737_v54, %v736_v52 }
 0x57f   : > { %v880_v58 = vadd.f32 %v879_v57, %v853_v55  ;;  %v739_v59 = vrot.slane %v738_v56, 2 }
 0x581   : > { %v882_v60 = vsel %vm479_vm1, %v880_v58, -inf  ;;  %v740_v61 = vadd.f32 %v739_v59, %v738_v56 }
 0x582   : > { %883 = vmax.xlane.f32.xlu2 %v882_v60 }
 0x583   : > { %v741_v62 = vrot.slane %v740_v61, 1 }
 0x585   : > { %v742_v63 = vadd.f32 %v741_v62, %v740_v61 }
 0x587   : > { %v769_v1 = vadd.f32 %v768_v0, %v742_v63 }
 0x589   : > { %v771_v2 = vsel %vm479_vm1, %v769_v1, -inf }
 0x58a   : > { %772 = vmax.xlane.f32.xlu1 %v771_v2 }
 0x5a3   : > { %893 = vrot.lane.b32.xlu1 %v1739_v12, %s1531_s16 }
 0x5f5   : > { %v884_v3 = vpop.xlane.xlu2 %883 }
 0x5f6   : > { %v885_v4 = vsub.f32 %v880_v58, %v884_v3 }
 0x5f8   : > { %v886_v5 = vmul.f32 1.442695, %v885_v4 }
 0x5fa   : > { %1275 = vpow2.f32 %v886_v5 }
 0x5fd   : > { %v773_v6 = vpop.xlane.xlu1 %772 }
 0x5fe   : > { %v774_v7 = vsub.f32 %v769_v1, %v773_v6 }
 0x600   : > { %v1276_v8 = vpop.eup %1275  ;;  %v775_v9 = vmul.f32 1.442695, %v774_v7 }
 0x601   : > { %v888_v10 = vsel %vm479_vm1, %v1276_v8, 0.0 }
 0x602   : > { %1277 = vpow2.f32 %v775_v9  ;;  %889 = vadd.xlane.f32.xlu0 %v888_v10 }
 0x608   : > { %v1278_v11 = vpop.eup %1277 }
 0x609   : > { %v777_v13 = vsel %vm479_vm1, %v1278_v11, 0.0 }
 0x60a   : > { %778 = vadd.xlane.f32.xlu2 %v777_v13 }
 0x615   : > { %v894_v14 = vpop.permute.xlu1 %893 }
 0x616   : > { %914 = vmatpush.msrb.mxu3 %v894_v14  ;;  %782 = vrot.lane.b32.xlu0 %v1739_v12, %s1532_s19 }
 0x622   : > { %920 = vrot.lane.b32.xlu2 %v1793_v25, %s1531_s16  ;;  %v937_v25 = vld [vmem:[#allocation10 + $0x8] sm:$0xff] }
 0x675   : > { %v890_v16 = vpop.xlane.xlu0 %889 }
 0x676   : > { %1279 = vrcp.f32 %v890_v16 }
 0x67c   : > { %v1280_v17 = vpop.eup %1279 }
 0x67d   : > { %v892_v18 = vmul.f32 %v1280_v17, %v1276_v8  ;;  %v779_v19 = vpop.xlane.xlu2 %778 }
 0x67e   : > { %1281 = vrcp.f32 %v779_v19 }
 0x67f   : > { %1143 = vmatmul.msk.f32.vlgmr.msrb.gmra.mxu3 %vm479_vm1, %v892_v18 }
 0x684   : > { %v1282_v15 = vpop.eup %1281 }
 0x685   : > { %v781_v20 = vmul.f32 %v1282_v15, %v1278_v11  ;;  %v921_v28 = vpop.permute.xlu2 %920 }
 0x686   : > { %v931_v29 = vsel %vm479_vm1, %v1795_v26, %v921_v28 }
 0x688   : > { %v783_v21 = vpop.permute.xlu0 %782 }
 0x689   : > { %803 = vmatpush.msra.mxu0 %v783_v21 }
 0x68a   : > { %1138 = vmatmul.msk.f32.vlgmr.msra.gmra.mxu0 %vm479_vm1, %v781_v20 }
 0x68b   : > { %959 = vmatpush.msrb.mxu0 %v939_v23 }
 0x68d   : > { %960 = vmatpush.msrb.mxu0 %v938_v24 }
 0x68f   : > { %961 = vmatpush.msrb.mxu0 %v937_v25 }
 0x691   : > { %962 = vmatpush.msrb.mxu0 %v936_v27 }
 0x702   : > { %v916_v22 = vpop.f32.mrf.mxu3 }
 0x703   : > { %928 = vrot.lane.b32.xlu1 %v916_v22, %s1523_s26  ;;  %s983_s26 = sshll.u32 %s979_s21, 4  ;;  %s984_s26 = int_to_ptr.hbm [resolvable:$true] %s983_s26 }
 0x704   : > { %s1447_s12 = sshra.s32 %s984_s26, 4  ;;  %s1448_s12 = int_to_ptr.hbm [resolvable:$true] %s1447_s12 }
 0x705   : > { %s1449_s2 = scalar_lea.hbm %s1448_s12, 8  ;;  %p1454_p7 = scmp.lt.s32.totalorder %s1448_s12, %s1862_s8 }
 0x706   : > { %p1450_p1 = scmp.ne.s32.totalorder %s1448_s12, %s1449_s2  ;;  %p1455_p9 = scmp.lt.s32.totalorder %s1453_s15, %s1449_s2 }
 0x707   : > { %v805_v12 = vpop.f32.mrf.mxu0 }
 0x708   : > { %924 = vrot.lane.b32.xlu0 %v805_v12, %s1532_s19  ;;  %p1451_p3 = pnand %p1450_p1, %p1658_p0  ;;  %p1456_p8 = por %p1455_p9, %p1454_p7 }
 0x70a   : > { %p1452_p13 = pneg %p1451_p3 }
 0x70c   : > { %p1457_p10 = pnand %p1456_p8, %p1452_p13 }
 0x775   : > { %v929_v31 = vpop.permute.xlu1 %928 }
 0x77a   : > { %v925_v30 = vpop.permute.xlu0 %924 }
 0x77b   : > { %v933_v32 = vsel %vm932_vm2, %v931_v29, %v925_v30 }
 0x77c   : > { %v935_v33 = vsel %vm934_vm3, %v933_v32, %v929_v31 }
 0x77d   : > { %1144 = vmatmul.msk.f32.vlgmr.msrb.gmra.mxu0 %vm421_vm0, %v935_v33 }
 0x7fa   : > { %v964_v26 = vpop.f32.mrf.mxu0 }
 0x7fb   : > { %v965_v35 = vadd.f32 %v1250_v34, %v964_v26 }
 0x7fd   : > { %967 = vst.msk [vmem:[%s410_s9] sm:$0xff] %vm421_vm0, %v965_v35 }
 0x7fe   : > { %1460 = shalt.err (!%p1457_p10)
}
 0x7ff   : > { %1165 = dma.vmem_to_hbm [thread:$0]  (%p1658_p0), %s982_s25, 128, %s984_s26, %s969_s17  }
 0x800 PF: > { %s1884_s6 = sld [smem:[#allocation18_spill]]  ;;  %s995_s13 = sand.u32 1, %s1499_s27  }
 0x801   : > { %s996_s16 = scalar_lea.sflag [#allocation4], %s995_s13 }
 0x806   : > { %p1885_p12 = scmp.ge.s32.totalorder %s1884_s6, 2 }
 0x808   : > { %p1185_p5 = pnand %p1885_p12, %p1664_p6 }
 0x80a   : > { %p1186_p11 = pneg %p1185_p5 }
 0x80c   : > { %1494 = dma.done.wait (%p1186_p11), %s996_s16, 128  }
 0x80d   : > { %1496 = vsyncadd (%p1186_p11), %s996_s16, 4294967168  ;;  %s1886_s30 = sld [smem:[#allocation19_spill]]  ;;  %s1889_s27 = smov %s1503_s28 }
 0x80e   : > { %s1887_s19 = sld [smem:[#allocation17_spill]] }
 0x80f   : > { %s1888_s29 = sld [smem:[#allocation20_spill]] }
 0x813   : > { %p25_p2 = scmp.ge.s32.totalorder %s1886_s30, 4  }
 0x814   : > { %s1890_s28 = smov %s1887_s19 }
 0x815   :  { %27 = sbr.rel (!%p25_p2) target bundleno = 12 (0xc), region = 122 }
 0x81a   :  { %1002 = vsyncpa [#allocation3], 1 }
 0x81b   :  { %1004 = vsyncpa [#allocation3 + $0x1], 1 }
 0x81c   :  { %1005 = vsyncpa [#allocation6], 1 }
 0x81d   :  { %1007 = vsyncpa [#allocation6 + $0x1], 1 }
 0x81e   :  { %1008 = vsyncpa [#allocation9], 1 }
 0x81f   :  { %1009 = vsyncpa [#allocation4], 1 }
 0x820   :  { %1011 = vsyncpa [#allocation4 + $0x1], 1 }

</bundles_post_ra>
